<compile_context>
chip_gen: v7x
topology: tpu7x:2x2x1
jax: 0.10.0
libtpu: 0.0.40
codegen_flags: <defaults>
</compile_context>

<pallas_src>
import functools

import jax
import jax.numpy as jnp
from jax import lax
from jax.experimental import pallas as pl
from jax.experimental.pallas import tpu as pltpu


def _round_up(x, m):
    return (x + m - 1) // m * m


def conv_module_kernel(x_ref, w1_ref, b1_ref, dww_ref, shift_ref, w2_ref, b2_ref,
                       o_ref, g_scr,
                       *, kernel_size, pad, halo, t_tile, t_orig, c_orig):
    # One grid step = one (batch, time-tile) block.
    # x_ref block: (1, 1, T_ext, C_pad) with T_ext = t_tile + 2*halo (halo >= pad).
    c_pad = o_ref.shape[-1]
    t_ext = t_tile + 2 * halo

    xe = x_ref[0, 0].astype(jnp.float32)                    # (T_ext, C_pad)

    # ---- LayerNorm statistics over the *original* C channels ----------------
    # Padded lanes of x are zero, so plain lane sums are exact.  One-pass
    # var = E[x^2] - mean^2 avoids a masked second pass over padded lanes.
    inv_c = 1.0 / c_orig
    mean = jnp.sum(xe, axis=-1, keepdims=True) * inv_c
    ex2 = jnp.sum(xe * xe, axis=-1, keepdims=True) * inv_c
    var = ex2 - mean * mean
    x_hat = (xe - mean) * lax.rsqrt(var + 1e-5)             # LN affine folded into W1

    # ---- pointwise_conv1 (bf16 MXU, f32 accumulate) + GLU --------------------
    h = jnp.dot(x_hat.astype(jnp.bfloat16), w1_ref[...],
                preferred_element_type=jnp.float32) + b1_ref[...]   # (T_ext, 2*C_pad)
    g = h[:, :c_pad] * jax.nn.sigmoid(h[:, c_pad:])                 # (T_ext, C_pad)

    # Zero rows lying outside [0, T) of the original sequence: this reproduces
    # the depthwise conv's 'same' zero padding and neutralizes tile overflow.
    row0 = pl.program_id(1) * t_tile - halo
    rows = lax.broadcasted_iota(jnp.int32, (t_ext, c_pad), 0) + row0
    g = jnp.where((rows >= 0) & (rows < t_orig), g, 0.0)

    # ---- depthwise conv via zero-masked VMEM scratch + static offset loads ---
    g_scr[...] = g
    y = jnp.zeros((t_tile, c_pad), jnp.float32)
    for k in range(kernel_size):                            # static unroll
        start = halo - pad + k                              # always in [0, 2*halo]
        y = y + g_scr[pl.ds(start, t_tile), :] * dww_ref[k:k + 1, :]
    # depthwise bias + eval BatchNorm folded into a single shift; Swish.
    y = y + shift_ref[...]
    y = y * jax.nn.sigmoid(y)

    # ---- pointwise_conv2 (bf16 MXU) + residual -------------------------------
    z = jnp.dot(y.astype(jnp.bfloat16), w2_ref[...],
                preferred_element_type=jnp.float32) + b2_ref[...]   # (t_tile, C_pad)
    res = x_ref[0, 0, halo:halo + t_tile, :].astype(jnp.float32)
    o_ref[0] = (res + z).astype(o_ref.dtype)


def convolution_module(x, params, kernel_size, t_tile=256):
    B, T, C = x.shape
    K = kernel_size
    pad = (K - 1) // 2

    f32, bf16 = jnp.float32, jnp.bfloat16

    # ---- tiling / padding geometry -------------------------------------------
    c_pad = _round_up(C, 128)                 # lane-dense channels
    t_tile = min(t_tile, _round_up(T, 8))     # time tile (multiple of 8)
    n_tiles = (T + t_tile - 1) // t_tile
    t_padded = n_tiles * t_tile
    halo = _round_up(pad, 4)                  # halo >= pad, keeps T_ext % 8 == 0
    t_ext = t_tile + 2 * halo

    # ---- one-time parameter folding (done in XLA outside the kernel) ---------
    ln_g = params["ln_g"].astype(f32)
    ln_b = params["ln_b"].astype(f32)
    w1 = params["w1"].astype(f32)
    b1 = params["b1"].astype(f32)
    # LayerNorm affine folded into pointwise_conv1.
    w1f = ln_g.reshape(C, 1) * w1                                  # (C, 2C)
    b1f = ln_b @ w1 + b1                                           # (1, 2C)
    # Eval BatchNorm folded into depthwise weight (scale) + shift.
    bn_scale = params["bn_g"].astype(f32) * lax.rsqrt(params["bn_v"].astype(f32) + 1e-5)
    dwf = params["dw_w"].astype(f32) * bn_scale                    # (K, C)
    shift = (params["dw_b"].astype(f32) - params["bn_m"].astype(f32)) * bn_scale \
        + params["bn_b"].astype(f32)                               # (1, C)
    w2f = params["w2"].astype(f32)
    b2f = params["b2"].astype(f32)

    # ---- pad channels to c_pad (zeros keep the math exact) -------------------
    w1a = jnp.zeros((c_pad, c_pad), f32).at[:C, :C].set(w1f[:, :C])
    w1b = jnp.zeros((c_pad, c_pad), f32).at[:C, :C].set(w1f[:, C:])
    w1_p = jnp.concatenate([w1a, w1b], axis=1).astype(bf16)        # (c_pad, 2*c_pad)
    b1a = jnp.zeros((1, c_pad), f32).at[:, :C].set(b1f[:, :C])
    b1b = jnp.zeros((1, c_pad), f32).at[:, :C].set(b1f[:, C:])
    b1_p = jnp.concatenate([b1a, b1b], axis=1)                     # (1, 2*c_pad)
    dw_p = jnp.zeros((K, c_pad), f32).at[:, :C].set(dwf)
    shift_p = jnp.zeros((1, c_pad), f32).at[:, :C].set(shift)
    w2_p = jnp.zeros((c_pad, c_pad), f32).at[:C, :C].set(w2f).astype(bf16)
    b2_p = jnp.zeros((1, c_pad), f32).at[:, :C].set(b2f)

    # ---- build per-tile halo-extended copy of x (zero padded) ----------------
    x_p = jnp.zeros((B, halo + t_padded + halo, c_pad), x.dtype)
    x_p = x_p.at[:, halo:halo + T, :C].set(x)
    x_ext = jnp.stack(
        [x_p[:, ti * t_tile: ti * t_tile + t_ext, :] for ti in range(n_tiles)],
        axis=1)                                                    # (B, n_tiles, t_ext, c_pad)

    kernel = functools.partial(
        conv_module_kernel, kernel_size=K, pad=pad, halo=halo,
        t_tile=t_tile, t_orig=T, c_orig=C)

    def param_spec(shape):
        return pl.BlockSpec(shape, lambda b, t: (0, 0))

    out = pl.pallas_call(
        kernel,
        out_shape=jax.ShapeDtypeStruct((B, t_padded, c_pad), x.dtype),
        grid_spec=pltpu.PrefetchScalarGridSpec(
            num_scalar_prefetch=0,
            grid=(B, n_tiles),
            in_specs=[
                pl.BlockSpec((1, 1, t_ext, c_pad), lambda b, t: (b, t, 0, 0)),  # x tiles
                param_spec((c_pad, 2 * c_pad)),                                 # W1 (folded, bf16)
                param_spec((1, 2 * c_pad)),                                     # b1 (folded)
                param_spec((K, c_pad)),                                         # depthwise w * bn scale
                param_spec((1, c_pad)),                                         # folded bias/BN shift
                param_spec((c_pad, c_pad)),                                     # W2 (bf16)
                param_spec((1, c_pad)),                                         # b2
            ],
            out_specs=pl.BlockSpec((1, t_tile, c_pad), lambda b, t: (b, t, 0)),
            scratch_shapes=[pltpu.VMEM((t_ext, c_pad), jnp.float32)],
        ),
        compiler_params=pltpu.CompilerParams(
            dimension_semantics=("parallel", "parallel")),
    )(x_ext, w1_p, b1_p, dw_p, shift_p, w2_p, b2_p)

    return out[:, :T, :C]


def reference(x, params, kernel_size):
    """Pure-JAX f32 reference with identical (eval-mode) semantics."""
    B, T, C = x.shape
    pad = (kernel_size - 1) // 2
    mean = jnp.mean(x, axis=-1, keepdims=True)
    xc = x - mean
    var = jnp.mean(xc * xc, axis=-1, keepdims=True)
    h = xc * lax.rsqrt(var + 1e-5) * params["ln_g"] + params["ln_b"]
    h = jnp.einsum("btc,cd->btd", h, params["w1"]) + params["b1"]
    g = h[..., :C] * jax.nn.sigmoid(h[..., C:])
    gp = jnp.pad(g, ((0, 0), (pad, pad), (0, 0)))
    y = sum(gp[:, k:k + T, :] * params["dw_w"][k] for k in range(kernel_size))
    y = y + params["dw_b"]
    y = (y - params["bn_m"]) * lax.rsqrt(params["bn_v"] + 1e-5)
    y = y * params["bn_g"] + params["bn_b"]
    y = y * jax.nn.sigmoid(y)
    z = jnp.einsum("btc,cd->btd", y, params["w2"]) + params["b2"]
    return x + z


if __name__ == "__main__":
    B, T, C, K = 2, 16, 32, 7   # kernel_size must be odd; small synthetic shapes

    key = jax.random.PRNGKey(0)
    keys = jax.random.split(key, 12)

    x = jax.random.normal(keys[0], (B, T, C), dtype=jnp.float32)

    params = {
        "ln_g": 1.0 + 0.1 * jax.random.normal(keys[1], (1, C), jnp.float32),
        "ln_b": 0.1 * jax.random.normal(keys[2], (1, C), jnp.float32),
        "w1":   0.1 * jax.random.normal(keys[3], (C, 2 * C), jnp.float32),
        "b1":   0.1 * jax.random.normal(keys[4], (1, 2 * C), jnp.float32),
        "dw_w": 0.1 * jax.random.normal(keys[5], (K, C), jnp.float32),
        "dw_b": 0.1 * jax.random.normal(keys[6], (1, C), jnp.float32),
        "bn_g": 1.0 + 0.1 * jax.random.normal(keys[7], (1, C), jnp.float32),
        "bn_b": 0.1 * jax.random.normal(keys[8], (1, C), jnp.float32),
        "bn_m": 0.1 * jax.random.normal(keys[9], (1, C), jnp.float32),
        "bn_v": 1.0 + 0.1 * jnp.abs(jax.random.normal(keys[10], (1, C), jnp.float32)),
        "w2":   0.1 * jax.random.normal(keys[11], (C, C), jnp.float32),
        "b2":   0.1 * jax.random.normal(keys[0], (1, C), jnp.float32),
    }

    out = convolution_module(x, params, K)
    out = jax.block_until_ready(out)

    ref = reference(x, params, K)
    assert out.shape == (B, T, C)
    max_err = float(jnp.max(jnp.abs(out - ref)))
    # bf16 MXU operands (f32 accumulate) -> tolerance loosened vs pure-f32 ref.
    assert jnp.allclose(out, ref, atol=2e-2, rtol=2e-2), f"mismatch vs reference: {max_err}"

    print("KERNEL_OK")
</pallas_src>

<mosaic_0001>
module attributes {stable_mosaic.version = 11 : i64} {
  func.func @conv_module_kernel(%arg0: i32, %arg1: i32, %arg2: memref<1x1x24x128xf32, #tpu.memory_space<vmem>>, %arg3: memref<128x256xbf16, #tpu.memory_space<vmem>>, %arg4: memref<1x256xf32, #tpu.memory_space<vmem>>, %arg5: memref<7x128xf32, #tpu.memory_space<vmem>>, %arg6: memref<1x128xf32, #tpu.memory_space<vmem>>, %arg7: memref<128x128xbf16, #tpu.memory_space<vmem>>, %arg8: memref<1x128xf32, #tpu.memory_space<vmem>>, %arg9: memref<1x16x128xf32, #tpu.memory_space<vmem>>, %arg10: memref<24x128xf32, #tpu.memory_space<vmem>>) attributes {dimension_semantics = [#tpu.dimension_semantics<parallel>, #tpu.dimension_semantics<parallel>], iteration_bounds = array<i64: 2, 1>, scalar_prefetch = 0 : i64, scratch_operands = 1 : i64, tpu.core_type = #tpu.core_type<tc>, window_params = [{transform_indices = @transform_0, window_bounds = array<i64: 1, 1, 24, 128>}, {pipeline_mode = #tpu.pipeline_mode<synchronous>, transform_indices = @transform_1, window_bounds = array<i64: 128, 256>}, {pipeline_mode = #tpu.pipeline_mode<synchronous>, transform_indices = @transform_2, window_bounds = array<i64: 1, 256>}, {pipeline_mode = #tpu.pipeline_mode<synchronous>, transform_indices = @transform_3, window_bounds = array<i64: 7, 128>}, {pipeline_mode = #tpu.pipeline_mode<synchronous>, transform_indices = @transform_4, window_bounds = array<i64: 1, 128>}, {pipeline_mode = #tpu.pipeline_mode<synchronous>, transform_indices = @transform_5, window_bounds = array<i64: 128, 128>}, {pipeline_mode = #tpu.pipeline_mode<synchronous>, transform_indices = @transform_6, window_bounds = array<i64: 1, 128>}, {transform_indices = @transform_7, window_bounds = array<i64: 1, 16, 128>}]} {
    %c0 = arith.constant 0 : index
    %c0_0 = arith.constant 0 : index
    %c0_1 = arith.constant 0 : index
    %c0_2 = arith.constant 0 : index
    %0 = vector.load %arg2[%c0, %c0_0, %c0_1, %c0_2] : memref<1x1x24x128xf32, #tpu.memory_space<vmem>>, vector<1x1x24x128xf32>
    %1 = vector.shape_cast %0 : vector<1x1x24x128xf32> to vector<24x128xf32>
    %cst = arith.constant dense<0.000000e+00> : vector<24xf32>
    %2 = vector.multi_reduction <add>, %1, %cst [1] : vector<24x128xf32> to vector<24xf32>
    %3 = vector.shape_cast %2 : vector<24xf32> to vector<24x1xf32>
    %cst_3 = arith.constant 3.125000e-02 : f32
    %4 = vector.broadcast %cst_3 : f32 to vector<24x1xf32>
    %5 = arith.mulf %3, %4 : vector<24x1xf32>
    %6 = arith.mulf %1, %1 : vector<24x128xf32>
    %cst_4 = arith.constant dense<0.000000e+00> : vector<24xf32>
    %7 = vector.multi_reduction <add>, %6, %cst_4 [1] : vector<24x128xf32> to vector<24xf32>
    %8 = vector.shape_cast %7 : vector<24xf32> to vector<24x1xf32>
    %cst_5 = arith.constant 3.125000e-02 : f32
    %9 = vector.broadcast %cst_5 : f32 to vector<24x1xf32>
    %10 = arith.mulf %8, %9 : vector<24x1xf32>
    %11 = arith.mulf %5, %5 : vector<24x1xf32>
    %12 = arith.subf %10, %11 : vector<24x1xf32>
    %13 = vector.broadcast %5 : vector<24x1xf32> to vector<24x128xf32>
    %14 = arith.subf %1, %13 : vector<24x128xf32>
    %cst_6 = arith.constant 9.99999974E-6 : f32
    %15 = vector.broadcast %cst_6 : f32 to vector<24x1xf32>
    %16 = arith.addf %12, %15 : vector<24x1xf32>
    %17 = math.rsqrt %16 : vector<24x1xf32>
    %18 = vector.broadcast %17 : vector<24x1xf32> to vector<24x128xf32>
    %19 = arith.mulf %14, %18 : vector<24x128xf32>
    %20 = arith.truncf %19 : vector<24x128xf32> to vector<24x128xbf16>
    %c0_7 = arith.constant 0 : index
    %c0_8 = arith.constant 0 : index
    %21 = vector.load %arg3[%c0_7, %c0_8] : memref<128x256xbf16, #tpu.memory_space<vmem>>, vector<128x256xbf16>
    %cst_9 = arith.constant dense<0.000000e+00> : vector<24x256xf32>
    %22 = tpu.matmul %20, %21, %cst_9 {dimension_numbers = #tpu.dot_dimension_numbers<[1], [0], [0], [1], [0, 0, 1, 1], [], []>} : vector<24x128xbf16>, vector<128x256xbf16>, vector<24x256xf32> -> vector<24x256xf32>
    %c0_10 = arith.constant 0 : index
    %c0_11 = arith.constant 0 : index
    %23 = vector.load %arg4[%c0_10, %c0_11] : memref<1x256xf32, #tpu.memory_space<vmem>>, vector<1x256xf32>
    %24 = vector.broadcast %23 : vector<1x256xf32> to vector<24x256xf32>
    %25 = arith.addf %22, %24 : vector<24x256xf32>
    %26 = vector.extract_strided_slice %25 {offsets = [0, 0], sizes = [24, 128], strides = [1, 1]} : vector<24x256xf32> to vector<24x128xf32>
    %27 = vector.extract_strided_slice %25 {offsets = [0, 128], sizes = [24, 128], strides = [1, 1]} : vector<24x256xf32> to vector<24x128xf32>
    %28 = arith.negf %27 : vector<24x128xf32>
    %29 = math.exp %28 : vector<24x128xf32>
    %cst_12 = arith.constant 1.000000e+00 : f32
    %30 = vector.broadcast %cst_12 : f32 to vector<24x128xf32>
    %31 = arith.addf %30, %29 : vector<24x128xf32>
    %32 = arith.divf %30, %31 : vector<24x128xf32>
    %33 = arith.mulf %26, %32 : vector<24x128xf32>
    %c16_i32 = arith.constant 16 : i32
    %34 = arith.muli %arg1, %c16_i32 : i32
    %c4_i32 = arith.constant 4 : i32
    %35 = arith.subi %34, %c4_i32 : i32
    %36 = tpu.iota {dimensions = array<i32: 0>} : vector<24x128xi32>
    %37 = vector.broadcast %35 : i32 to vector<24x128xi32>
    %38 = arith.addi %36, %37 : vector<24x128xi32>
    %c0_i32 = arith.constant 0 : i32
    %39 = vector.broadcast %c0_i32 : i32 to vector<24x128xi32>
    %40 = arith.cmpi sge, %38, %39 : vector<24x128xi32>
    %c16_i32_13 = arith.constant 16 : i32
    %41 = vector.broadcast %c16_i32_13 : i32 to vector<24x128xi32>
    %42 = arith.cmpi slt, %38, %41 : vector<24x128xi32>
    %43 = arith.andi %40, %42 : vector<24x128xi1>
    %cst_14 = arith.constant 0.000000e+00 : f32
    %44 = vector.broadcast %cst_14 : f32 to vector<24x128xf32>
    %45 = arith.select %43, %33, %44 : vector<24x128xi1>, vector<24x128xf32>
    %c0_15 = arith.constant 0 : index
    %c0_16 = arith.constant 0 : index
    %46 = vector.load %arg10[%c0_15, %c0_16] : memref<24x128xf32, #tpu.memory_space<vmem>>, vector<24x128xf32>
    tpu.vector_store %arg10[%c0_15, %c0_16], %45 {strides = array<i32>} : memref<24x128xf32, #tpu.memory_space<vmem>>, vector<24x128xf32>,
    %cst_17 = arith.constant 0.000000e+00 : f32
    %47 = vector.broadcast %cst_17 : f32 to vector<16x128xf32>
    %c1 = arith.constant 1 : index
    %c0_18 = arith.constant 0 : index
    %48 = vector.load %arg10[%c1, %c0_18] : memref<24x128xf32, #tpu.memory_space<vmem>>, vector<16x128xf32>
    %c0_19 = arith.constant 0 : index
    %c0_20 = arith.constant 0 : index
    %49 = vector.load %arg5[%c0_19, %c0_20] : memref<7x128xf32, #tpu.memory_space<vmem>>, vector<1x128xf32>
    %50 = vector.broadcast %49 : vector<1x128xf32> to vector<16x128xf32>
    %51 = arith.mulf %48, %50 : vector<16x128xf32>
    %52 = arith.addf %47, %51 : vector<16x128xf32>
    %c2 = arith.constant 2 : index
    %c0_21 = arith.constant 0 : index
    %53 = vector.load %arg10[%c2, %c0_21] : memref<24x128xf32, #tpu.memory_space<vmem>>, vector<16x128xf32>
    %c1_22 = arith.constant 1 : index
    %c0_23 = arith.constant 0 : index
    %54 = vector.load %arg5[%c1_22, %c0_23] : memref<7x128xf32, #tpu.memory_space<vmem>>, vector<1x128xf32>
    %55 = vector.broadcast %54 : vector<1x128xf32> to vector<16x128xf32>
    %56 = arith.mulf %53, %55 : vector<16x128xf32>
    %57 = arith.addf %52, %56 : vector<16x128xf32>
    %c3 = arith.constant 3 : index
    %c0_24 = arith.constant 0 : index
    %58 = vector.load %arg10[%c3, %c0_24] : memref<24x128xf32, #tpu.memory_space<vmem>>, vector<16x128xf32>
    %c2_25 = arith.constant 2 : index
    %c0_26 = arith.constant 0 : index
    %59 = vector.load %arg5[%c2_25, %c0_26] : memref<7x128xf32, #tpu.memory_space<vmem>>, vector<1x128xf32>
    %60 = vector.broadcast %59 : vector<1x128xf32> to vector<16x128xf32>
    %61 = arith.mulf %58, %60 : vector<16x128xf32>
    %62 = arith.addf %57, %61 : vector<16x128xf32>
    %c4 = arith.constant 4 : index
    %c0_27 = arith.constant 0 : index
    %63 = vector.load %arg10[%c4, %c0_27] : memref<24x128xf32, #tpu.memory_space<vmem>>, vector<16x128xf32>
    %c3_28 = arith.constant 3 : index
    %c0_29 = arith.constant 0 : index
    %64 = vector.load %arg5[%c3_28, %c0_29] : memref<7x128xf32, #tpu.memory_space<vmem>>, vector<1x128xf32>
    %65 = vector.broadcast %64 : vector<1x128xf32> to vector<16x128xf32>
    %66 = arith.mulf %63, %65 : vector<16x128xf32>
    %67 = arith.addf %62, %66 : vector<16x128xf32>
    %c5 = arith.constant 5 : index
    %c0_30 = arith.constant 0 : index
    %68 = vector.load %arg10[%c5, %c0_30] : memref<24x128xf32, #tpu.memory_space<vmem>>, vector<16x128xf32>
    %c4_31 = arith.constant 4 : index
    %c0_32 = arith.constant 0 : index
    %69 = vector.load %arg5[%c4_31, %c0_32] : memref<7x128xf32, #tpu.memory_space<vmem>>, vector<1x128xf32>
    %70 = vector.broadcast %69 : vector<1x128xf32> to vector<16x128xf32>
    %71 = arith.mulf %68, %70 : vector<16x128xf32>
    %72 = arith.addf %67, %71 : vector<16x128xf32>
    %c6 = arith.constant 6 : index
    %c0_33 = arith.constant 0 : index
    %73 = vector.load %arg10[%c6, %c0_33] : memref<24x128xf32, #tpu.memory_space<vmem>>, vector<16x128xf32>
    %c5_34 = arith.constant 5 : index
    %c0_35 = arith.constant 0 : index
    %74 = vector.load %arg5[%c5_34, %c0_35] : memref<7x128xf32, #tpu.memory_space<vmem>>, vector<1x128xf32>
    %75 = vector.broadcast %74 : vector<1x128xf32> to vector<16x128xf32>
    %76 = arith.mulf %73, %75 : vector<16x128xf32>
    %77 = arith.addf %72, %76 : vector<16x128xf32>
    %c7 = arith.constant 7 : index
    %c0_36 = arith.constant 0 : index
    %78 = vector.load %arg10[%c7, %c0_36] : memref<24x128xf32, #tpu.memory_space<vmem>>, vector<16x128xf32>
    %c6_37 = arith.constant 6 : index
    %c0_38 = arith.constant 0 : index
    %79 = vector.load %arg5[%c6_37, %c0_38] : memref<7x128xf32, #tpu.memory_space<vmem>>, vector<1x128xf32>
    %80 = vector.broadcast %79 : vector<1x128xf32> to vector<16x128xf32>
    %81 = arith.mulf %78, %80 : vector<16x128xf32>
    %82 = arith.addf %77, %81 : vector<16x128xf32>
    %c0_39 = arith.constant 0 : index
    %c0_40 = arith.constant 0 : index
    %83 = vector.load %arg6[%c0_39, %c0_40] : memref<1x128xf32, #tpu.memory_space<vmem>>, vector<1x128xf32>
    %84 = vector.broadcast %83 : vector<1x128xf32> to vector<16x128xf32>
    %85 = arith.addf %82, %84 : vector<16x128xf32>
    %86 = arith.negf %85 : vector<16x128xf32>
    %87 = math.exp %86 : vector<16x128xf32>
    %cst_41 = arith.constant 1.000000e+00 : f32
    %88 = vector.broadcast %cst_41 : f32 to vector<16x128xf32>
    %89 = arith.addf %88, %87 : vector<16x128xf32>
    %90 = arith.divf %88, %89 : vector<16x128xf32>
    %91 = arith.mulf %85, %90 : vector<16x128xf32>
    %92 = arith.truncf %91 : vector<16x128xf32> to vector<16x128xbf16>
    %c0_42 = arith.constant 0 : index
    %c0_43 = arith.constant 0 : index
    %93 = vector.load %arg7[%c0_42, %c0_43] : memref<128x128xbf16, #tpu.memory_space<vmem>>, vector<128x128xbf16>
    %cst_44 = arith.constant dense<0.000000e+00> : vector<16x128xf32>
    %94 = tpu.matmul %92, %93, %cst_44 {dimension_numbers = #tpu.dot_dimension_numbers<[1], [0], [0], [1], [0, 0, 1, 1], [], []>} : vector<16x128xbf16>, vector<128x128xbf16>, vector<16x128xf32> -> vector<16x128xf32>
    %c0_45 = arith.constant 0 : index
    %c0_46 = arith.constant 0 : index
    %95 = vector.load %arg8[%c0_45, %c0_46] : memref<1x128xf32, #tpu.memory_space<vmem>>, vector<1x128xf32>
    %96 = vector.broadcast %95 : vector<1x128xf32> to vector<16x128xf32>
    %97 = arith.addf %94, %96 : vector<16x128xf32>
    %c0_47 = arith.constant 0 : index
    %c0_48 = arith.constant 0 : index
    %c4_49 = arith.constant 4 : index
    %c0_50 = arith.constant 0 : index
    %98 = vector.load %arg2[%c0_47, %c0_48, %c4_49, %c0_50] : memref<1x1x24x128xf32, #tpu.memory_space<vmem>>, vector<1x1x16x128xf32>
    %99 = vector.shape_cast %98 : vector<1x1x16x128xf32> to vector<16x128xf32>
    %100 = arith.addf %99, %97 : vector<16x128xf32>
    %c0_51 = arith.constant 0 : index
    %c0_52 = arith.constant 0 : index
    %c0_53 = arith.constant 0 : index
    %101 = vector.load %arg9[%c0_51, %c0_52, %c0_53] : memref<1x16x128xf32, #tpu.memory_space<vmem>>, vector<1x16x128xf32>
    %102 = vector.shape_cast %101 : vector<1x16x128xf32> to vector<16x128xf32>
    %103 = vector.shape_cast %100 : vector<16x128xf32> to vector<1x16x128xf32>
    tpu.vector_store %arg9[%c0_51, %c0_52, %c0_53], %103 {strides = array<i32>} : memref<1x16x128xf32, #tpu.memory_space<vmem>>, vector<1x16x128xf32>,
    return
  }
  func.func @transform_0(%arg0: i32, %arg1: i32) -> (i32, i32, i32, i32) {
    %c0_i32 = arith.constant 0 : i32
    %c0_i32_0 = arith.constant 0 : i32
    %c0_i32_1 = arith.constant 0 : i32
    return %arg0, %arg1, %c0_i32, %c0_i32_0 : i32, i32, i32, i32
  }
  func.func @transform_1(%arg0: i32, %arg1: i32) -> (i32, i32) {
    %c0_i32 = arith.constant 0 : i32
    %c0_i32_0 = arith.constant 0 : i32
    %c0_i32_1 = arith.constant 0 : i32
    return %c0_i32, %c0_i32_0 : i32, i32
  }
  func.func @transform_2(%arg0: i32, %arg1: i32) -> (i32, i32) {
    %c0_i32 = arith.constant 0 : i32
    %c0_i32_0 = arith.constant 0 : i32
    %c0_i32_1 = arith.constant 0 : i32
    return %c0_i32, %c0_i32_0 : i32, i32
  }
  func.func @transform_3(%arg0: i32, %arg1: i32) -> (i32, i32) {
    %c0_i32 = arith.constant 0 : i32
    %c0_i32_0 = arith.constant 0 : i32
    %c0_i32_1 = arith.constant 0 : i32
    return %c0_i32, %c0_i32_0 : i32, i32
  }
  func.func @transform_4(%arg0: i32, %arg1: i32) -> (i32, i32) {
    %c0_i32 = arith.constant 0 : i32
    %c0_i32_0 = arith.constant 0 : i32
    %c0_i32_1 = arith.constant 0 : i32
    return %c0_i32, %c0_i32_0 : i32, i32
  }
  func.func @transform_5(%arg0: i32, %arg1: i32) -> (i32, i32) {
    %c0_i32 = arith.constant 0 : i32
    %c0_i32_0 = arith.constant 0 : i32
    %c0_i32_1 = arith.constant 0 : i32
    return %c0_i32, %c0_i32_0 : i32, i32
  }
  func.func @transform_6(%arg0: i32, %arg1: i32) -> (i32, i32) {
    %c0_i32 = arith.constant 0 : i32
    %c0_i32_0 = arith.constant 0 : i32
    %c0_i32_1 = arith.constant 0 : i32
    return %c0_i32, %c0_i32_0 : i32, i32
  }
  func.func @transform_7(%arg0: i32, %arg1: i32) -> (i32, i32, i32) {
    %c0_i32 = arith.constant 0 : i32
    %c0_i32_0 = arith.constant 0 : i32
    return %arg0, %arg1, %c0_i32 : i32, i32, i32
  }
}

</mosaic_0001>

<bundles_post_ra>
// kernel: tpu_custom_call.1
= control target key start
LH: loop header
LB: loop body
LE: loop exit
PB: predicated region body
PF: predicated region fallthrough
CT: control target
= control target key end

     0   :  { %12 = vsyncpa [#allocation4], 0  ;;  %s1715_s0 = inlined_call_operand.hbm [shape: f32[2,1,24,128], index: 0, kind: input, shape index: {}]   ;;  %s1716_s1 = inlined_call_operand.hbm [shape: bf16[128,256], index: 1, kind: input, shape index: {}]   ;;  %s1717_s2 = inlined_call_operand.vmem [shape: f32[1,256], index: 2, kind: input, shape index: {}]   ;;  %s1718_s3 = inlined_call_operand.vmem [shape: f32[7,128], index: 3, kind: input, shape index: {}]   ;;  %s1719_s4 = inlined_call_operand.vmem [shape: f32[1,128], index: 4, kind: input, shape index: {}]   ;;  %s1720_s5 = inlined_call_operand.hbm [shape: bf16[128,128], index: 5, kind: input, shape index: {}]   ;;  %s1721_s6 = inlined_call_operand.vmem [shape: f32[1,128], index: 6, kind: input, shape index: {}]   ;;  %s1722_s7 = inlined_call_operand.hbm [shape: f32[2,16,128], index: 7, kind: output, shape index: {}]  }
   0x1   :  { %14 = vsyncpa [#allocation4 + $0x1], 0 }
   0x2   :  { %15 = vsyncpa [#allocation7], 0 }
   0x3   :  { %16 = vsyncpa [#allocation5], 0 }
   0x4   :  { %18 = vsyncpa [#allocation5 + $0x1], 0  ;;  %s1400_s24 = smov 0   ;;  %s1402_s25 = smov 0  }
   0x5   :  { %s1404_s26 = smov 0   ;;  %s1406_s27 = smov 0  }
   0x6   :  { %s1408_s28 = smov 0   ;;  %s1410_s29 = smov 0  }
   0x7 LB: > { %1731 = sst [smem:[#allocation13_spill]] %s1325_s24  ;;  %s936_s30 = sadd.s32 4294967295, %s1345_s29   ;;  %s1345_s29 = sphi %s1410_s29, %s24_s29   ;;  %s1341_s28 = sphi %s1408_s28, %s1754_s28   ;;  %s1337_s27 = sphi %s1406_s27, %s1753_s27   ;;  %s1333_s26 = sphi %s1404_s26, %s1752_s26   ;;  %s1329_s25 = sphi %s1402_s25, %s1751_s25   ;;  %s1325_s24 = sphi %s1400_s24, %s1750_s24  }
   0x8   : > { %s937_s8 = sadd.s32 4294967294, %s1345_s29   ;;  %p58_p0 = scmp.ne.s32.totalorder %s1329_s25, %s1325_s24 }
   0x9   : > { %p1434_p1 = scmp.eq.s32.totalorder %s936_s30, 0  ;;  %p1438_p2 = scmp.eq.s32.totalorder %s936_s30, 1 }
   0xa   : > { %p216_p3 = scmp.eq.s32.totalorder %s937_s8, 1  ;;  %p938_p5 = scmp.ge.s32.totalorder %s1345_s29, 1 }
   0xb   : > { %s1732_s9 = scalar_select %p1434_p1, 1, 0 }
   0xc   : > { %p1444_p4 = por %p1434_p1, %p58_p0  ;;  %p1449_p6 = por %p216_p3, %p58_p0 }
   0xd   : > { %p223_p7 = scmp.lt.s32.totalorder %s1345_s29, 3  ;;  %s1347_s14 = smov [#allocation6]  }
   0xe   : > { %s1734_s11 = scalar_select %p1444_p4, 1, 0 }
   0xf   : > { %s1735_s12 = scalar_select %p1449_p6, 1, 0 }
  0x10   : > { %p1454_p8 = pnand %p938_p5, %p223_p7  ;;  %s235_s15 = sshll.u32 %s1347_s14, 4  ;;  %s1458_s15 = int_to_ptr.vmem [resolvable:$true] %s235_s15 }
  0x11   : > { %1736 = sst [smem:[#allocation14_spill]] %s1735_s12  ;;  %s1348_s17 = smov [#allocation8]  }
  0x12   : > { %p1035_p9 = pneg %p1454_p8  ;;  %s257_s18 = sshll.u32 %s1348_s17, 4  ;;  %s1469_s18 = int_to_ptr.vmem [resolvable:$true] %s257_s18 }
  0x13   : > { %s1173_s21 = scalar_lea.hbm %s1716_s1, 2048 }
  0x14   : > { %p1465_p11 = pnand %p1035_p9, %p1434_p1  ;;  %p1174_p12 = scmp.ne.s32.totalorder %s1716_s1, %s1173_s21 }
  0x15   : > { %p1180_p5 = scmp.lt.u32.totalorder %s1173_s21, %s1716_s1 }
  0x16   : > { %p1175_p13 = pneg %p1465_p11 }
  0x18   : > { %p1176_p0 = pnand %p1175_p13, %p1174_p12 }
  0x1a   : > { %p1177_p3 = pneg %p1176_p0 }
  0x1c   : > { %p1182_p7 = pnand %p1180_p5, %p1177_p3 }
  0x1e   : > { %1185 = shalt.err (!%p1182_p7)
}
  0x1f   : > { %s1186_s14 = scalar_lea.vmem %s1458_s15, 2048  ;;  %p1194_p1 = scmp.lt.s32.totalorder %s1458_s15, %s1458_s15 }
  0x20   : > { %p1187_p9 = scmp.ne.s32.totalorder %s1458_s15, %s1186_s14  ;;  %p1195_p12 = scmp.lt.s32.totalorder %s1186_s14, %s1186_s14 }
  0x22   : > { %p1189_p10 = pnand %p1187_p9, %p1175_p13  ;;  %p1196_p0 = por %p1195_p12, %p1194_p1 }
  0x24   : > { %p1190_p6 = pneg %p1189_p10 }
  0x26   : > { %p1197_p4 = pnand %p1196_p0, %p1190_p6 }
  0x28   : > { %1200 = shalt.err (!%p1197_p4)
}
  0x29   : > { %s1728_s17 = smov 128   ;;  %s1729_s19 = smov 8  }
  0x2a   : > { %1038 = dma.hbm_to_vmem [thread:$0]  (!%p1465_p11), %s1716_s1, 2048, %s1458_s15, [#allocation7], %s1728_s17, %s1728_s17, %s1729_s19  }
  0x2b   : > { %s1201_s30 = scalar_lea.hbm %s1720_s5, 1024 }
  0x2c   : > { %p1202_p1 = scmp.ne.s32.totalorder %s1720_s5, %s1201_s30  ;;  %p1208_p10 = scmp.lt.u32.totalorder %s1201_s30, %s1720_s5 }
  0x2e   : > { %p1204_p4 = pnand %p1202_p1, %p1175_p13 }
  0x30   : > { %p1205_p6 = pneg %p1204_p4 }
  0x32   : > { %p1210_p3 = pnand %p1208_p10, %p1205_p6 }
  0x34   : > { %1213 = shalt.err (!%p1210_p3)
}
  0x35   : > { %s1214_s15 = scalar_lea.vmem %s1469_s18, 1024  ;;  %p1222_p12 = scmp.lt.s32.totalorder %s1469_s18, %s1469_s18 }
  0x36   : > { %p1215_p5 = scmp.ne.s32.totalorder %s1469_s18, %s1214_s15  ;;  %p1223_p0 = scmp.lt.s32.totalorder %s1214_s15, %s1214_s15 }
  0x38   : > { %p1217_p7 = pnand %p1215_p5, %p1175_p13  ;;  %p1224_p1 = por %p1223_p0, %p1222_p12 }
  0x3a   : > { %p1218_p9 = pneg %p1217_p7 }
  0x3c   : > { %p1225_p4 = pnand %p1224_p1, %p1218_p9 }
  0x3e   : > { %1228 = shalt.err (!%p1225_p4)
}
  0x3f   : > { %s1351_s24 = smov 64   ;;  %s1352_s12 = smov 4  }
  0x40   : > { %1041 = dma.hbm_to_vmem [thread:$0]  (!%p1465_p11), %s1720_s5, 1024, %s1469_s18, [#allocation7], %s1351_s24, %s1351_s24, %s1352_s12  }
  0x41   : > { %s36_s22 = sadd.s32 1, %s1341_s28  ;;  %s45_s23 = sadd.s32 1, %s1333_s26 }
  0x42   : > { %p38_p13 = scmp.ge.s32.totalorder %s36_s22, 2  ;;  %p52_p6 = scmp.ne.s32.totalorder %s1333_s26, %s1329_s25 }
  0x43   : > { %p53_p10 = scmp.eq.s32.totalorder %s1345_s29, 0  ;;  %p1052_p3 = scmp.lt.s32.totalorder %s1345_s29, 2 }
  0x44   : > { %s1756_s22 = smov (%p38_p13, %s36_s22), 0  ;;  %p1536_p7 = por %p1438_p2, %p52_p6 }
  0x45   : > { %p54_p5 = por %p53_p10, %p52_p6  ;;  %s40_s16 = ssub.s32 %s1341_s28, %s1756_s22 }
  0x46   : > { %s1739_s30 = scalar_select %p1536_p7, 1, 0 }
  0x47   : > { %s274_s8 = sand.u32 1, %s1333_s26   ;;  %p43_p9 = scmp.eq.s32.totalorder %s40_s16, 0 }
  0x48   : > { %s1020_s18 = smul.u32 24, %s274_s8  ;;  %p1543_p11 = pnand %p1052_p3, %p54_p5 }
  0x49   : > { %s1548_s15 = scalar_select %p43_p9, %s1333_s26, %s45_s23  }
  0x4a   : > { %s1021_s24 = smul.u32 384, %s1341_s28  ;;  %s278_s12 = scalar_lea.vmem [#allocation3], %s1020_s18 }
  0x4b   : > { %s287_s20 = sshll.u32 %s278_s12, 4  ;;  %s1558_s16 = scalar_lea.sflag [#allocation4], %s274_s8  ;;  %s1556_s20 = int_to_ptr.vmem [resolvable:$true] %s287_s20 }
  0x4c   : > { %s1554_s17 = scalar_lea.hbm %s1715_s0, %s1021_s24  ;;  %p1231_p12 = pneg %p1543_p11 }
  0x4d   : > { %s1229_s19 = scalar_lea.hbm %s1554_s17, 384  ;;  %s1234_s24 = scalar_lea.hbm %s1715_s0, 768 }
  0x4e   : > { %p1230_p2 = scmp.ne.s32.totalorder %s1554_s17, %s1229_s19  ;;  %p1235_p4 = scmp.lt.u32.totalorder %s1554_s17, %s1715_s0 }
  0x4f   : > { %p1236_p13 = scmp.lt.u32.totalorder %s1234_s24, %s1229_s19  ;;  %p1238_p10 = scmp.lt.u32.totalorder %s1229_s19, %s1554_s17 }
  0x50   : > { %p1232_p0 = pnand %p1231_p12, %p1230_p2 }
  0x51   : > { %p1237_p6 = por %p1236_p13, %p1235_p4 }
  0x52   : > { %p1233_p1 = pneg %p1232_p0 }
  0x53   : > { %p1239_p3 = por %p1238_p10, %p1237_p6 }
  0x55   : > { %p1240_p5 = pnand %p1239_p3, %p1233_p1 }
  0x57   : > { %1243 = shalt.err (!%p1240_p5)
}
  0x58   : > { %s1244_s8 = scalar_lea.vmem %s1556_s20, 384  ;;  %s1353_s21 = smov [#allocation3]  }
  0x59   : > { %p1245_p9 = scmp.ne.s32.totalorder %s1556_s20, %s1244_s8  ;;  %s1249_s23 = sshll.u32 %s1353_s21, 4  ;;  %s1250_s23 = int_to_ptr.vmem [resolvable:$false] %s1249_s23 }
  0x5a   : > { %s1251_s18 = scalar_lea.vmem %s1250_s23, 768  ;;  %p1252_p7 = scmp.lt.s32.totalorder %s1556_s20, %s1250_s23 }
  0x5b   : > { %p1247_p2 = pnand %p1245_p9, %p1231_p12  ;;  %p1253_p4 = scmp.lt.s32.totalorder %s1251_s18, %s1244_s8 }
  0x5d   : > { %p1248_p0 = pneg %p1247_p2  ;;  %p1254_p13 = por %p1253_p4, %p1252_p7 }
  0x5f   : > { %p1255_p6 = pnand %p1254_p13, %p1248_p0 }
  0x61   : > { %1258 = shalt.err (!%p1255_p6)
}
  0x62   : > { %s1741_s19 = smov 8   ;;  %s1742_s24 = smov 128  }
  0x63   : > { %1045 = dma.hbm_to_vmem [thread:$0]  (!%p1543_p11), %s1554_s17, 384, %s1556_s20, %s1558_s16, %s1742_s24, %s1742_s24, %s1741_s19  }
  0x64   : > { %299 = sbr.rel (%p1454_p8) target bundleno = 821 (0x335), region = 48  ;;  %s1592_s12 = sand.u32 (!%p1454_p8), 1, %s1329_s25  }
  0x65   : > { %s1022_s10 = smul.u32 (!%p1454_p8), 24, %s1592_s12  ;;  %s302_s8 = scalar_lea.sflag (!%p1454_p8), [#allocation4], %s1592_s12 }
  0x66   : > { %p1743_p7 = scmp.ne.s32.totalorder (!%p1454_p8), %s1734_s11, 0 }
  0x67   : > { %s1596_s21 = scalar_lea.vmem (!%p1454_p8), [#allocation3], %s1022_s10 }
  0x6b   : > { %1312 = dma.done.wait (%p1743_p7), %s302_s8, 384  }
  0x6c   : > { %1314 = vsyncadd (%p1743_p7), %s302_s8, 4294966912  ;;  %p1744_p11 = scmp.ne.s32.totalorder %s1732_s9, 0 }
  0x6e   : > { %1316 = dma.done.wait (%p1744_p11), [#allocation7], 3072  }
  0x6f   : > { %1318 = vsyncadd (%p1744_p11), [#allocation7], 4294964224  ;;  %v1607_v0 = vld [vmem:[%s1596_s21] sm:$0xff]  ;;  %v1610_v1 = vld [vmem:[%s1596_s21 + $0x8] sm:$0xff]  ;;  %v1354_v21 = vmov 0   ;;  %v1355_v56 = vmov 0.0  }
  0x70   : > { %349 = vadd.xlane.f32.xlu0 %v1607_v0  ;;  %v358_v2 = vmul.f32 %v1607_v0, %v1607_v0  ;;  %v1115_v3 = vld [vmem:[#allocation6 + $0x4] ss:$8 sps:$4 sm:$0xff]   ;;  %v1117_v5 = vld [vmem:[#allocation6] ss:$8 sps:$4 sm:$0xff]   ;;  %v359_v6 = vmul.f32 %v1610_v1, %v1610_v1  ;;  %v1118_v7 = vld [vmem:[#allocation6 + $0x14] ss:$8 sps:$4 sm:$0xff]   ;;  %530 = vmatprep.mubr.bf16.mxu0 %v1354_v21 }
  0x71   : > { %v1616_v4 = vld [vmem:[%s1596_s21 + $0x10] sm:$0xff]  ;;  %498 = vmatprep.subr.bf16.mxu0 %v1115_v3  ;;  %1000 = vmatprep.subr.bf16.mxu1 %v1355_v56  ;;  %vm1356_vm0 = vmmov 0   ;;  %v1140_v57 = vld [vmem:[#allocation8 + $0x8] sm:$0xff]   ;;  %v1141_v58 = vld [vmem:[#allocation8 + $0x10] sm:$0xff]   ;;  %s946_s20 = sshll.u32 %s1592_s12, 4  ;;  %s990_s24 = sshll.u32 %s1337_s27, 8 }
  0x72   : > { %361 = vadd.xlane.f32.xlu1 %v358_v2  ;;  %499 = vmatpush1.bf16.msra.mxu0 %v1117_v5  ;;  %v360_v8 = vmul.f32 %v1616_v4, %v1616_v4  ;;  %v1120_v9 = vld [vmem:[#allocation6 + $0x10] ss:$8 sps:$4 sm:$0xff]   ;;  %v1121_v10 = vld [vmem:[#allocation6 + $0x24] ss:$8 sps:$4 sm:$0xff]   ;;  %v1123_v11 = vld [vmem:[#allocation6 + $0x20] ss:$8 sps:$4 sm:$0xff]   ;;  %s1666_s9 = scalar_lea.hbm %s1722_s7, %s990_s24 }
  0x73   : > { %500 = vmatprep.subr.bf16.mxu0 %v1118_v7  ;;  %v1124_v12 = vld [vmem:[#allocation6 + $0x34] ss:$8 sps:$4 sm:$0xff]   ;;  %v1126_v13 = vld [vmem:[#allocation6 + $0x30] ss:$8 sps:$4 sm:$0xff]   ;;  %v1127_v14 = vld [vmem:[#allocation6 + $0x44] ss:$8 sps:$4 sm:$0xff]   ;;  %1016 = vmatprep.mubr.msk.bf16.mxu1 %vm1356_vm0, %v1355_v56 }
  0x74   : > { %351 = vadd.xlane.f32.xlu0 %v1610_v1  ;;  %v1129_v15 = vld [vmem:[#allocation6 + $0x40] ss:$8 sps:$4 sm:$0xff]   ;;  %v1130_v16 = vld [vmem:[#allocation6 + $0x54] ss:$8 sps:$4 sm:$0xff]   ;;  %v1132_v17 = vld [vmem:[#allocation6 + $0x50] ss:$8 sps:$4 sm:$0xff]  }
  0x75   : > { %v1133_v18 = vld [vmem:[#allocation6 + $0x64] ss:$8 sps:$4 sm:$0xff]   ;;  %v1135_v19 = vld [vmem:[#allocation6 + $0x60] ss:$8 sps:$4 sm:$0xff]   ;;  %v1136_v20 = vld [vmem:[#allocation6 + $0x74] ss:$8 sps:$4 sm:$0xff]  }
  0x76   : > { %363 = vadd.xlane.f32.xlu1 %v359_v6  ;;  %501 = vmatpush1.bf16.msra.mxu0 %v1120_v9  ;;  %v1138_v22 = vld [vmem:[#allocation6 + $0x70] ss:$8 sps:$4 sm:$0xff]   ;;  %v1139_v55 = vld [vmem:[#allocation8] sm:$0xff]   ;;  %v1144_v61 = vld [vmem:[#allocation8 + $0x28] sm:$0xff]   ;;  %s343_s18 = scalar_lea.vmem [#allocation9], %s946_s20  ;;  %s815_s11 = scalar_lea.sflag [#allocation5], %s1592_s12 }
  0x77   : > { %502 = vmatprep.subr.bf16.mxu0 %v1121_v10  ;;  %1001 = vmatpush3.bf16.msra.mxu1 %v1139_v55  ;;  %v1142_v59 = vld [vmem:[#allocation8 + $0x18] sm:$0xff]   ;;  %v1143_v60 = vld [vmem:[#allocation8 + $0x20] sm:$0xff]   ;;  %v1145_v62 = vld [vmem:[#allocation8 + $0x30] sm:$0xff]   ;;  %s830_s19 = sshll.u32 %s343_s18, 4  ;;  %p1745_p12 = scmp.ne.s32.totalorder %s1739_s30, 0  ;;  %s1661_s19 = int_to_ptr.vmem [resolvable:$true] %s830_s19 }
  0x78   : > { %353 = vadd.xlane.f32.xlu0 %v1616_v4  ;;  %1002 = vmatprep.subr.bf16.mxu1 %v1355_v56  ;;  %v1146_v63 = vld [vmem:[#allocation8 + $0x38] sm:$0xff]   ;;  %s1259_s27 = scalar_lea.vmem %s1661_s19, 256 }
  0x79   : > { %v406_v3 = vld [vmem:[%s1717_s2] sm:$0x3]  ;;  %p1260_p8 = scmp.ne.s32.totalorder %s1661_s19, %s1259_s27 }
  0x7a   : > { %365 = vadd.xlane.f32.xlu1 %v360_v8  ;;  %503 = vmatpush1.bf16.msra.mxu0 %v1123_v11 }
  0x7b   : > { %504 = vmatprep.subr.bf16.mxu0 %v1124_v12  ;;  %1003 = vmatpush3.bf16.msra.mxu1 %v1140_v57  ;;  %p1261_p1 = pnand %p1260_p8, %p1745_p12 }
  0x7c   : > { %1004 = vmatprep.subr.bf16.mxu1 %v1355_v56 }
  0x7d   : > { %p1262_p10 = pneg %p1261_p1 }
  0x7e   : > { %505 = vmatpush1.bf16.msra.mxu0 %v1126_v13 }
  0x7f   : > { %506 = vmatprep.subr.bf16.mxu0 %v1127_v14  ;;  %1005 = vmatpush3.bf16.msra.mxu1 %v1141_v58  ;;  %v971_v58 = vld [vmem:[%s1718_s3 + $0x5] ss:$0 sm:$0xff] }
  0x80   : > { %1006 = vmatprep.subr.bf16.mxu1 %v1355_v56 }
  0x82   : > { %507 = vmatpush1.bf16.msra.mxu0 %v1129_v15 }
  0x83   : > { %508 = vmatprep.subr.bf16.mxu0 %v1130_v16  ;;  %1007 = vmatpush3.bf16.msra.mxu1 %v1142_v59 }
  0x84   : > { %1008 = vmatprep.subr.bf16.mxu1 %v1355_v56 }
  0x86   : > { %509 = vmatpush1.bf16.msra.mxu0 %v1132_v17 }
  0x87   : > { %510 = vmatprep.subr.bf16.mxu0 %v1133_v18  ;;  %1009 = vmatpush3.bf16.msra.mxu1 %v1143_v60 }
  0x88   : > { %1010 = vmatprep.subr.bf16.mxu1 %v1355_v56 }
  0x8a   : > { %511 = vmatpush1.bf16.msra.mxu0 %v1135_v19 }
  0x8b   : > { %512 = vmatprep.subr.bf16.mxu0 %v1136_v20  ;;  %1011 = vmatpush3.bf16.msra.mxu1 %v1144_v61 }
  0x8c   : > { %1012 = vmatprep.subr.bf16.mxu1 %v1355_v56 }
  0x8e   : > { %513 = vmatpush1.bf16.msra.mxu0 %v1138_v22 }
  0x8f   : > { %1013 = vmatpush3.bf16.msra.mxu1 %v1145_v62 }
  0x90   : > { %1014 = vmatprep.subr.bf16.mxu1 %v1355_v56 }
  0x93   : > { %1015 = vmatpush3.bf16.msra.mxu1 %v1146_v63 }
  0xfd   : > { %v350_v23 = vpop.xlane.xlu0 %349 }
  0xfe   : > { %v355_v24 = vmul.f32 0.03125, %v350_v23 }
  0xff   : > { %v362_v25 = vpop.xlane.xlu1 %361 }
 0x100   : > { %v370_v26 = vmul.f32 %v355_v24, %v355_v24  ;;  %v367_v27 = vmul.f32 0.03125, %v362_v25  ;;  %v376_v45 = vsub.f32 %v1607_v0, %v355_v24  ;;  %v408_v0 = vlaneseq }
 0x101   : > { %v352_v28 = vpop.xlane.xlu0 %351 }
 0x102   : > { %v373_v29 = vsub.f32 %v367_v27, %v370_v26  ;;  %v356_v30 = vmul.f32 0.03125, %v352_v28 }
 0x103   : > { %v364_v31 = vpop.xlane.xlu1 %363 }
 0x104   : > { %v379_v32 = vadd.f32 1e-05, %v373_v29  ;;  %v371_v33 = vmul.f32 %v356_v30, %v356_v30  ;;  %v368_v34 = vmul.f32 0.03125, %v364_v31  ;;  %v377_v46 = vsub.f32 %v1610_v1, %v356_v30 }
 0x105   : > { %v354_v35 = vpop.xlane.xlu0 %353  ;;  %v409_v1 = vshrl.u32 %v408_v0, 7 }
 0x106   : > { %v374_v36 = vsub.f32 %v368_v34, %v371_v33  ;;  %v357_v37 = vmul.f32 0.03125, %v354_v35  ;;  %1147 = vrsqrt.f32 %v379_v32 }
 0x107   : > { %v366_v38 = vpop.xlane.xlu1 %365  ;;  %v414_v2 = vsub.s32 1, %v409_v1  ;;  %v410_v23 = vsub.s32 0, %v409_v1  ;;  %v577_v26 = vadd.s32 4294967292, %v409_v1  ;;  %v575_v30 = vadd.s32 16, %v409_v1 }
 0x108   : > { %v380_v39 = vadd.f32 1e-05, %v374_v36  ;;  %v372_v40 = vmul.f32 %v357_v37, %v357_v37  ;;  %v369_v41 = vmul.f32 0.03125, %v366_v38  ;;  %v378_v52 = vsub.f32 %v1616_v4, %v357_v37 }
 0x109   : > { %v415_v4 = vrot.slane %v406_v3, %v414_v2  ;;  %v411_v25 = vrot.slane %v406_v3, %v410_v23  ;;  %vm580_vm1 = vcmp.ge.s32.totalorder %v577_v26, 0  ;;  %v579_v36 = vadd.s32 4294967292, %v575_v30  ;;  %v972_v3 = vld [vmem:[%s1718_s3 + $0x6] ss:$0 sm:$0xff] }
 0x10a   : > { %1149 = vrsqrt.f32 %v380_v39  ;;  %v375_v42 = vsub.f32 %v369_v41, %v372_v40  ;;  %v966_v40 = vld [vmem:[%s1718_s3] ss:$0 sm:$0xff]  ;;  %v967_v41 = vld [vmem:[%s1718_s3 + $0x1] ss:$0 sm:$0xff] }
 0x10b   : > { %vm585_vm2 = vcmp.lt.s32.totalorder %v579_v36, 16 }
 0x10c   : > { %v381_v43 = vadd.f32 1e-05, %v375_v42 }
 0x10e   : > { %1151 = vrsqrt.f32 %v381_v43  ;;  %v968_v43 = vld [vmem:[%s1718_s3 + $0x2] ss:$0 sm:$0xff] }
 0x110   : > { %v1148_v44 = vpop.eup %1147 }
 0x111   : > { %v385_v48 = vmul.f32 %v1148_v44, %v376_v45 }
 0x114   : > { %v1150_v47 = vpop.eup %1149 }
 0x115   : > { %v386_v49 = vmul.f32 %v1150_v47, %v377_v46 }
 0x117   : > { %v388_v50 = vpack.c.bf16 %v386_v49, %v385_v48 }
 0x118   : > { %v1152_v51 = vpop.eup %1151 }
 0x119   : > { %531 = vmatmul.mubr.bf16.vlgmr.msra.gmra.mrb[0].mxu0 %v388_v50  ;;  %v387_v53 = vmul.f32 %v1152_v51, %v378_v52  ;;  %v969_v50 = vld [vmem:[%s1718_s3 + $0x3] ss:$0 sm:$0xff] }
 0x11a   : > { %540 = vmatprep.mubr.bf16.mxu0 %v1354_v21 }
 0x11b   : > { %v389_v54 = vpack.c.bf16 %v387_v53, %v387_v53 }
 0x121   : > { %541 = vmatmul.mubr.bf16.gmra.mrb[4].mxu0 %v389_v54  ;;  %v970_v54 = vld [vmem:[%s1718_s3 + $0x4] ss:$0 sm:$0xff] }
 0x1ec   : > { %v532_v5 = vpop.f32.mrb[0].mxu0 }
 0x1ed   : > { %v534_v6 = vpop.f32.mrb[1].mxu0  ;;  %v533_v28 = vadd.f32 %v532_v5, %v411_v25 }
 0x1ee   : > { %v535_v7 = vadd.f32 %v534_v6, %v415_v4  ;;  %v536_v8 = vpop.f32.mrb[2].mxu0 }
 0x1ef   : > { %v538_v9 = vpop.f32.mrb[3].mxu0  ;;  %v537_v32 = vadd.f32 %v536_v8, %v411_v25 }
 0x1f0   : > { %v963_v10 = vmul.f32 -1.442695, %v535_v7  ;;  %v539_v11 = vadd.f32 %v538_v9, %v415_v4 }
 0x1f2   : > { %1153 = vpow2.f32 %v963_v10  ;;  %v964_v12 = vmul.f32 -1.442695, %v539_v11 }
 0x1f4   : > { %1155 = vpow2.f32 %v964_v12  ;;  %v542_v13 = vpop.f32.mrb[4].mxu0 }
 0x1f5   : > { %v544_v14 = vpop.f32.mrb[5].mxu0  ;;  %v543_v37 = vadd.f32 %v542_v13, %v411_v25 }
 0x1f6   : > { %v545_v15 = vadd.f32 %v544_v14, %v415_v4  ;;  %v546_v16 = vpop.f32.mrb[6].mxu0  ;;  %v973_v14 = vld [vmem:[%s1719_s4] ss:$0 sm:$0xff] }
 0x1f7   : > { %v547_v17 = vpop.f32.mrb[7].mxu0 }
 0x1f8   : > { %v965_v18 = vmul.f32 -1.442695, %v545_v15 }
 0x1fa   : > { %1157 = vpow2.f32 %v965_v18 }
 0x1fc   : > { %v1154_v19 = vpop.eup %1153 }
 0x1fd   : > { %v558_v20 = vadd.f32 1.0, %v1154_v19 }
 0x1fe   : > { %v1156_v21 = vpop.eup %1155 }
 0x1ff   : > { %1159 = vrcp.f32 %v558_v20  ;;  %v559_v22 = vadd.f32 1.0, %v1156_v21 }
 0x201   : > { %1161 = vrcp.f32 %v559_v22 }
 0x204   : > { %v1158_v24 = vpop.eup %1157 }
 0x205   : > { %v560_v27 = vadd.f32 1.0, %v1158_v24 }
 0x207   : > { %1163 = vrcp.f32 %v560_v27 }
 0x209   : > { %v1160_v29 = vpop.eup %1159 }
 0x20a   : > { %v567_v31 = vmul.f32 %v1160_v29, %v533_v28 }
 0x20b   : > { %v1162_v33 = vpop.eup %1161 }
 0x20c   : > { %v589_v34 = vsel %vm580_vm1, %v567_v31, 0.0  ;;  %v568_v35 = vmul.f32 %v1162_v33, %v537_v32 }
 0x20d   : > { %592 = vst [vmem:[#allocation2] sm:$0xff] %v589_v34 }
 0x20e   : > { %593 = vst [vmem:[#allocation2 + $0x8] sm:$0xff] %v568_v35 }
 0x211   : > { %v1164_v38 = vpop.eup %1163 }
 0x212   : > { %v569_v39 = vmul.f32 %v1164_v38, %v543_v37  ;;  %v976_v38 = vld [vmem:[%s1721_s6] ss:$0 sm:$0xff] }
 0x214   : > { %v591_v42 = vsel %vm585_vm2, %v569_v39, 0.0 }
 0x215   : > { %594 = vst [vmem:[#allocation2 + $0x10] sm:$0xff] %v591_v42  ;;  %v595_v44 = vld [vmem:[#allocation2 + $0x1] sm:$0xff] }
 0x216   : > { %v606_v45 = vld [vmem:[#allocation2 + $0x2] sm:$0xff]  ;;  %v602_v47 = vmul.f32 %v966_v40, %v595_v44 }
 0x217   : > { %v617_v46 = vld [vmem:[#allocation2 + $0x3] sm:$0xff]  ;;  %v613_v48 = vmul.f32 %v967_v41, %v606_v45 }
 0x218   : > { %v628_v49 = vld [vmem:[#allocation2 + $0x4] sm:$0xff]  ;;  %v624_v52 = vmul.f32 %v968_v43, %v617_v46 }
 0x219   : > { %v615_v51 = vadd.f32 %v613_v48, %v602_v47  ;;  %v639_v53 = vld [vmem:[#allocation2 + $0x5] sm:$0xff]  ;;  %v635_v56 = vmul.f32 %v969_v50, %v628_v49 }
 0x21a   : > { %v650_v57 = vld [vmem:[#allocation2 + $0x6] sm:$0xff]  ;;  %v646_v63 = vmul.f32 %v970_v54, %v639_v53 }
 0x21b   : > { %v626_v55 = vadd.f32 %v624_v52, %v615_v51  ;;  %v661_v2 = vld [vmem:[#allocation2 + $0x7] sm:$0xff]  ;;  %v657_v6 = vmul.f32 %v971_v58, %v650_v57 }
 0x21c   : > { %v596_v59 = vld [vmem:[#allocation2 + $0x9] sm:$0xff]  ;;  %v668_v11 = vmul.f32 %v972_v3, %v661_v2 }
 0x21d   : > { %v607_v60 = vld [vmem:[#allocation2 + $0xa] sm:$0xff]  ;;  %v637_v62 = vadd.f32 %v635_v56, %v626_v55  ;;  %v603_v0 = vmul.f32 %v966_v40, %v596_v59  ;;  %v808_v40 = vld [vmem:[%s1596_s21 + $0x4] sm:$0xff] }
 0x21e   : > { %v618_v61 = vld [vmem:[#allocation2 + $0xb] sm:$0xff]  ;;  %v614_v1 = vmul.f32 %v967_v41, %v607_v60 }
 0x21f   : > { %v629_v4 = vld [vmem:[#allocation2 + $0xc] sm:$0xff]  ;;  %v648_v5 = vadd.f32 %v646_v63, %v637_v62  ;;  %v625_v8 = vmul.f32 %v968_v43, %v618_v61  ;;  %v809_v44 = vld [vmem:[%s1596_s21 + $0xc] sm:$0xff]  ;;  %s1357_s21 = smov [#allocation9]  }
 0x220   : > { %v616_v7 = vadd.f32 %v614_v1, %v603_v0  ;;  %v640_v9 = vld [vmem:[#allocation2 + $0xd] sm:$0xff]  ;;  %v636_v13 = vmul.f32 %v969_v50, %v629_v4  ;;  %s1263_s13 = sshll.u32 %s1357_s21, 4  ;;  %s1264_s13 = int_to_ptr.vmem [resolvable:$false] %s1263_s13 }
 0x221   : > { %v659_v10 = vadd.f32 %v657_v6, %v648_v5  ;;  %v651_v15 = vld [vmem:[#allocation2 + $0xe] sm:$0xff]  ;;  %v647_v18 = vmul.f32 %v970_v54, %v640_v9  ;;  %s1265_s17 = scalar_lea.vmem %s1264_s13, 512  ;;  %p1266_p3 = scmp.lt.s32.totalorder %s1661_s19, %s1264_s13 }
 0x222   : > { %v627_v12 = vadd.f32 %v625_v8, %v616_v7  ;;  %v662_v19 = vld [vmem:[#allocation2 + $0xf] sm:$0xff]  ;;  %v658_v22 = vmul.f32 %v971_v58, %v651_v15  ;;  %p1267_p5 = scmp.lt.s32.totalorder %s1265_s17, %s1259_s27 }
 0x223   : > { %v670_v16 = vadd.f32 %v668_v11, %v659_v10  ;;  %v669_v25 = vmul.f32 %v972_v3, %v662_v19 }
 0x224   : > { %v638_v17 = vadd.f32 %v636_v13, %v627_v12  ;;  %p1268_p9 = por %p1267_p5, %p1266_p3 }
 0x225   : > { %v679_v20 = vadd.f32 %v973_v14, %v670_v16 }
 0x226   : > { %v649_v21 = vadd.f32 %v647_v18, %v638_v17  ;;  %p1269_p2 = pnand %p1268_p9, %p1262_p10 }
 0x227   : > { %v974_v23 = vmul.f32 -1.442695, %v679_v20 }
 0x228   : > { %v660_v24 = vadd.f32 %v658_v22, %v649_v21 }
 0x229   : > { %1165 = vpow2.f32 %v974_v23 }
 0x22a   : > { %v671_v26 = vadd.f32 %v669_v25, %v660_v24 }
 0x22c   : > { %v680_v27 = vadd.f32 %v973_v14, %v671_v26 }
 0x22e   : > { %v975_v28 = vmul.f32 -1.442695, %v680_v27 }
 0x230   : > { %1167 = vpow2.f32 %v975_v28 }
 0x233   : > { %v1166_v29 = vpop.eup %1165 }
 0x234   : > { %v687_v30 = vadd.f32 1.0, %v1166_v29 }
 0x236   : > { %1169 = vrcp.f32 %v687_v30 }
 0x23a   : > { %v1168_v31 = vpop.eup %1167 }
 0x23b   : > { %v688_v32 = vadd.f32 1.0, %v1168_v31 }
 0x23d   : > { %1171 = vrcp.f32 %v688_v32 }
 0x240   : > { %v1170_v33 = vpop.eup %1169 }
 0x241   : > { %v693_v35 = vmul.f32 %v1170_v33, %v679_v20 }
 0x247   : > { %v1172_v34 = vpop.eup %1171 }
 0x248   : > { %v694_v36 = vmul.f32 %v1172_v34, %v680_v27 }
 0x24a   : > { %v695_v37 = vpack.c.bf16 %v694_v36, %v693_v35 }
 0x24c   : > { %1017 = vmatmul.mubr.bf16.vlgmr.msra.gmra.mrb[0].mxu1 %v695_v37 }
 0x31f   : > { %v801_v39 = vpop.f32.mrb[0].mxu1 }
 0x320   : > { %v802_v41 = vadd.f32 %v976_v38, %v801_v39  ;;  %v1018_v42 = vpop.f32.mrb[1].mxu1 }
 0x321   : > { %v804_v43 = vpop.f32.mrb[2].mxu1 }
 0x322   : > { %v810_v45 = vadd.f32 %v808_v40, %v802_v41  ;;  %v805_v46 = vadd.f32 %v976_v38, %v804_v43  ;;  %v1019_v47 = vpop.f32.mrb[3].mxu1 }
 0x324   : > { %812 = vst [vmem:[%s343_s18] sm:$0xff] %v810_v45  ;;  %v811_v48 = vadd.f32 %v809_v44, %v805_v46 }
 0x326   : > { %813 = vst [vmem:[%s343_s18 + $0x8] sm:$0xff] %v811_v48 }
 0x327   : > { %1272 = shalt.err (!%p1269_p2)
}
 0x328   : > { %s1273_s14 = scalar_lea.hbm %s1666_s9, 256  ;;  %s1277_s23 = scalar_lea.hbm %s1722_s7, 512 }
 0x329   : > { %p1274_p0 = scmp.ne.s32.totalorder %s1666_s9, %s1273_s14  ;;  %p1278_p6 = scmp.lt.u32.totalorder %s1666_s9, %s1722_s7 }
 0x32a   : > { %p1279_p7 = scmp.lt.u32.totalorder %s1277_s23, %s1273_s14  ;;  %p1281_p8 = scmp.lt.u32.totalorder %s1273_s14, %s1666_s9 }
 0x32b   : > { %p1275_p4 = pnand %p1274_p0, %p1745_p12 }
 0x32c   : > { %p1280_p11 = por %p1279_p7, %p1278_p6 }
 0x32d   : > { %p1276_p13 = pneg %p1275_p4 }
 0x32e   : > { %p1282_p1 = por %p1281_p8, %p1280_p11 }
 0x330   : > { %p1283_p10 = pnand %p1282_p1, %p1276_p13 }
 0x332   : > { %1286 = shalt.err (!%p1283_p10)
}
 0x333   : > { %s1358_s10 = smov 128   ;;  %s1359_s8 = smov 8  }
 0x334   : > { %1033 = dma.vmem_to_hbm [thread:$0]  (%p1745_p12), %s1661_s19, 256, %s1666_s9, %s815_s11, %s1358_s10, %s1358_s10, %s1359_s8  }
 0x335 PF: > { %s1746_s27 = sld [smem:[#allocation13_spill]]  ;;  %s1747_s21 = sld [smem:[#allocation14_spill]] }
 0x336   : > { %p1749_p5 = scmp.ge.s32.totalorder %s1345_s29, 2 }
 0x33b   : > { %s845_s13 = sand.u32 1, %s1746_s27   ;;  %p1748_p3 = scmp.ne.s32.totalorder %s1747_s21, 0 }
 0x33c   : > { %s846_s17 = scalar_lea.sflag [#allocation5], %s845_s13 }
 0x33d   : > { %p1047_p9 = pnand %p1749_p5, %p1748_p3 }
 0x33f   : > { %1320 = dma.done.wait (!%p1047_p9), %s846_s17, 256  }
 0x340   : > { %1322 = vsyncadd (!%p1047_p9), %s846_s17, 4294967040  ;;  %s24_s29 = sadd.s32 1, %s1345_s29   ;;  %s1750_s24 = smov %s1329_s25 }
 0x341   : > { %p21_p2 = scmp.ge.s32.totalorder %s24_s29, 4   ;;  %s1751_s25 = smov %s1333_s26 }
 0x342   : > { %s1752_s26 = smov %s1548_s15  ;;  %s1753_s27 = smov %s1341_s28 }
 0x343   : > { %s1754_s28 = smov %s1756_s22  ;;  %23 = sbr.rel (!%p21_p2) target bundleno = 7 (0x7), region = 101 }
 0x34a   :  { %851 = vsyncpa [#allocation4], 1 }
 0x34b   :  { %853 = vsyncpa [#allocation4 + $0x1], 1 }
 0x34c   :  { %854 = vsyncpa [#allocation7], 1 }
 0x34d   :  { %855 = vsyncpa [#allocation5], 1 }
 0x34e   :  { %857 = vsyncpa [#allocation5 + $0x1], 1 }

</bundles_post_ra>
